<compile_context>
chip_gen: v5e
topology: v5e:2x2
jax: 0.10.0
libtpu: 0.0.40
codegen_flags: <defaults>
</compile_context>

<pallas_src>
import math

import jax
import jax.numpy as jnp
from jax.experimental import pallas as pl
from jax.experimental.pallas import tpu as pltpu


def _activation_net(v):
    """Elementwise equivalent of ActivationNet.forward (exact, simplified form).

    relu(v-0.1) - relu(v) == -clip(v, 0, 0.1), so the three-ReLU expression
    collapses to one relu + one clip (5 VPU ops per element).
    """
    return jnp.maximum(v - 0.2, 0.0) - jnp.clip(v, 0.0, 0.1)


def nestnet_kernel(x_ref, w_in_ref, b_in_ref, w_h_ref, b_h_ref,
                   w_out_ref, b_out_ref, o_ref):
    """One batch tile.  x_ref: (input_dim, tb) bf16;  o_ref: (output_dim, tb) f32."""
    bf16 = jnp.bfloat16

    # input layer + activation  (bf16 MXU operands, f32 accumulation)
    h = jnp.dot(w_in_ref[...], x_ref[...],
                preferred_element_type=jnp.float32) + b_in_ref[...]
    h = _activation_net(h)

    # hidden layers (n_layers is static -> unrolled Python loop)
    n_layers = w_h_ref.shape[0]
    for i in range(n_layers):
        h = jnp.dot(w_h_ref[i], h.astype(bf16),
                    preferred_element_type=jnp.float32) + b_h_ref[i]
        h = _activation_net(h)

    # output layer (no activation)
    out = jnp.dot(w_out_ref[...], h.astype(bf16),
                  preferred_element_type=jnp.float32) + b_out_ref[...]
    o_ref[...] = out.astype(o_ref.dtype)


def _pick_batch_tile(B):
    # Lane-dense tiles: batch rides the 128-lane axis.  Bigger tiles amortize the
    # ~0.35us per-grid-step overhead; keep >=2 steps when B allows so the x/out
    # DMAs pipeline and v7x can shard the grid over both TensorCores.
    if B <= 256:
        return 128
    if B <= 2048:
        return 256
    return 512


def nestnet_forward(x, params, *, batch_tile=None):
    """x: (B, input_dim) float32.  params: dict of f32 weights/biases (torch layout)."""
    B, input_dim = x.shape
    w_in, b_in = params["w_in"], params["b_in"]          # (W, in),  (W, 1)
    w_h, b_h = params["w_h"], params["b_h"]              # (L, W, W), (L, W, 1)
    w_out, b_out = params["w_out"], params["b_out"]      # (out, W), (out, 1)
    n_width = w_in.shape[0]
    n_layers = w_h.shape[0]
    output_dim = w_out.shape[0]

    tb = _pick_batch_tile(B) if batch_tile is None else batch_tile
    if tb % 128 != 0:
        raise ValueError("batch_tile must be a multiple of 128 (TPU lane width)")
    n_tiles = pl.cdiv(B, tb)
    Bp = n_tiles * tb

    # batch on the lane (last) axis; bf16 input (the MXU operands are bf16 anyway,
    # so this halves x HBM traffic with identical numerics); zero-pad ragged B.
    xT = x.T.astype(jnp.bfloat16)
    if Bp != B:
        xT = jnp.pad(xT, ((0, 0), (0, Bp - B)))

    # bf16 matmul operands (halves weight HBM traffic); biases stay f32.
    w_in_b = w_in.astype(jnp.bfloat16)
    w_h_b = w_h.astype(jnp.bfloat16)
    w_out_b = w_out.astype(jnp.bfloat16)

    # NOTE: for very wide/deep configs (n_layers * n_width^2 approaching tens of
    # MiB) the weight blocks should be streamed over an extra "arbitrary" layer
    # grid axis (and vmem_limit_bytes raised) to stay inside v7x's 64 MiB VMEM.
    # At the sizes used here all weights are a few KiB, so they stay resident.
    out_t = pl.pallas_call(
        nestnet_kernel,
        out_shape=jax.ShapeDtypeStruct((output_dim, Bp), x.dtype),
        grid_spec=pltpu.PrefetchScalarGridSpec(
            num_scalar_prefetch=0,
            grid=(n_tiles,),
            in_specs=[
                pl.BlockSpec((input_dim, tb), lambda i: (0, i)),
                pl.BlockSpec((n_width, input_dim), lambda i: (0, 0)),
                pl.BlockSpec((n_width, 1), lambda i: (0, 0)),
                pl.BlockSpec((n_layers, n_width, n_width), lambda i: (0, 0, 0)),
                pl.BlockSpec((n_layers, n_width, 1), lambda i: (0, 0, 0)),
                pl.BlockSpec((output_dim, n_width), lambda i: (0, 0)),
                pl.BlockSpec((output_dim, 1), lambda i: (0, 0)),
            ],
            out_specs=pl.BlockSpec((output_dim, tb), lambda i: (0, i)),
        ),
        compiler_params=pltpu.CompilerParams(
            dimension_semantics=("parallel",),
            # raise v5e's 16 MiB default scoped VMEM; safely below physical on
            # all generations (incl. v7x's 64 MiB).
            vmem_limit_bytes=32 * 1024 * 1024),
    )(xT, w_in_b, b_in, w_h_b, b_h, w_out_b, b_out)

    # back to (B, output_dim), dropping any batch padding.
    return out_t[:, :B].T


# ---------------------------------------------------------------------------
# Deterministic parameter init mimicking NestNet._init_weights:
# kaiming_uniform_ (relu gain) on each Linear weight, bias = 0.
# The PyTorch module reseeds with the same seed before every Linear, so all
# identically-shaped hidden layers share weights; we mimic that by reusing the
# same key for every layer (exact torch RNG values are not reproduced).
# Weights are stored in the PyTorch (out_features, in_features) layout.
# ActivationNet's hand-set constants are folded into _activation_net above.
# ---------------------------------------------------------------------------
def kaiming_uniform(key, out_features, in_features):
    bound = math.sqrt(2.0) * math.sqrt(3.0 / in_features)   # gain(relu)*sqrt(3/fan_in)
    return jax.random.uniform(key, (out_features, in_features), jnp.float32,
                              minval=-bound, maxval=bound)


def init_nestnet_params(n_width, n_layers, input_dim, output_dim, seed):
    key = jax.random.PRNGKey(seed)
    w_in = kaiming_uniform(key, n_width, input_dim)
    b_in = jnp.zeros((n_width, 1), jnp.float32)
    w_hidden = kaiming_uniform(key, n_width, n_width)        # same key every layer
    w_h = jnp.tile(w_hidden[None], (n_layers, 1, 1))
    b_h = jnp.zeros((n_layers, n_width, 1), jnp.float32)
    w_out = kaiming_uniform(key, output_dim, n_width)
    b_out = jnp.zeros((output_dim, 1), jnp.float32)
    return dict(w_in=w_in, b_in=b_in, w_h=w_h, b_h=b_h, w_out=w_out, b_out=b_out)


def nestnet_reference(x, p):
    """Pure-JAX reference mirroring the kernel's bf16-matmul / f32-elementwise math."""
    bf16 = jnp.bfloat16
    h = jnp.dot(p["w_in"].astype(bf16), x.T.astype(bf16),
                preferred_element_type=jnp.float32) + p["b_in"]
    h = _activation_net(h)
    for i in range(p["w_h"].shape[0]):
        h = jnp.dot(p["w_h"][i].astype(bf16), h.astype(bf16),
                    preferred_element_type=jnp.float32) + p["b_h"][i]
        h = _activation_net(h)
    out = jnp.dot(p["w_out"].astype(bf16), h.astype(bf16),
                  preferred_element_type=jnp.float32) + p["b_out"]
    return out.T


if __name__ == "__main__":
    # Small shapes consistent with the module; B=512 gives a 2-step grid with the
    # default 256-row, lane-dense batch tile (so DMAs double-buffer).
    B, input_dim, n_width, n_layers, output_dim, seed = 512, 4, 32, 3, 2, 0

    params = init_nestnet_params(n_width, n_layers, input_dim, output_dim, seed)
    x = jax.random.normal(jax.random.PRNGKey(0), (B, input_dim), jnp.float32)

    out = jax.block_until_ready(nestnet_forward(x, params))

    ref = nestnet_reference(x, params)
    assert out.shape == (B, output_dim)
    assert jnp.allclose(out, ref, atol=1e-3, rtol=1e-3), "mismatch vs JAX reference"

    print("KERNEL_OK")
</pallas_src>

<mosaic_0001>
module attributes {stable_mosaic.version = 11 : i64} {
  func.func @nestnet_kernel(%arg0: i32, %arg1: memref<4x256xbf16, #tpu.memory_space<vmem>>, %arg2: memref<32x4xbf16, #tpu.memory_space<vmem>>, %arg3: memref<32x1xf32, #tpu.memory_space<vmem>>, %arg4: memref<3x32x32xbf16, #tpu.memory_space<vmem>>, %arg5: memref<3x32x1xf32, #tpu.memory_space<vmem>>, %arg6: memref<2x32xbf16, #tpu.memory_space<vmem>>, %arg7: memref<2x1xf32, #tpu.memory_space<vmem>>, %arg8: memref<2x256xf32, #tpu.memory_space<vmem>>) attributes {dimension_semantics = [#tpu.dimension_semantics<parallel>], iteration_bounds = array<i64: 2>, scalar_prefetch = 0 : i64, scratch_operands = 0 : i64, tpu.core_type = #tpu.core_type<tc>, window_params = [{transform_indices = @transform_0, window_bounds = array<i64: 4, 256>}, {pipeline_mode = #tpu.pipeline_mode<synchronous>, transform_indices = @transform_1, window_bounds = array<i64: 32, 4>}, {pipeline_mode = #tpu.pipeline_mode<synchronous>, transform_indices = @transform_2, window_bounds = array<i64: 32, 1>}, {pipeline_mode = #tpu.pipeline_mode<synchronous>, transform_indices = @transform_3, window_bounds = array<i64: 3, 32, 32>}, {pipeline_mode = #tpu.pipeline_mode<synchronous>, transform_indices = @transform_4, window_bounds = array<i64: 3, 32, 1>}, {pipeline_mode = #tpu.pipeline_mode<synchronous>, transform_indices = @transform_5, window_bounds = array<i64: 2, 32>}, {pipeline_mode = #tpu.pipeline_mode<synchronous>, transform_indices = @transform_6, window_bounds = array<i64: 2, 1>}, {transform_indices = @transform_7, window_bounds = array<i64: 2, 256>}]} {
    %c0 = arith.constant 0 : index
    %c0_0 = arith.constant 0 : index
    %0 = vector.load %arg2[%c0, %c0_0] : memref<32x4xbf16, #tpu.memory_space<vmem>>, vector<32x4xbf16>
    %c0_1 = arith.constant 0 : index
    %c0_2 = arith.constant 0 : index
    %1 = vector.load %arg1[%c0_1, %c0_2] : memref<4x256xbf16, #tpu.memory_space<vmem>>, vector<4x256xbf16>
    %cst = arith.constant dense<0.000000e+00> : vector<32x256xf32>
    %2 = tpu.matmul %0, %1, %cst {dimension_numbers = #tpu.dot_dimension_numbers<[1], [0], [0], [1], [0, 0, 1, 1], [], []>} : vector<32x4xbf16>, vector<4x256xbf16>, vector<32x256xf32> -> vector<32x256xf32>
    %c0_3 = arith.constant 0 : index
    %c0_4 = arith.constant 0 : index
    %3 = vector.load %arg3[%c0_3, %c0_4] : memref<32x1xf32, #tpu.memory_space<vmem>>, vector<32x1xf32>
    %4 = vector.broadcast %3 : vector<32x1xf32> to vector<32x256xf32>
    %5 = arith.addf %2, %4 : vector<32x256xf32>
    %cst_5 = arith.constant 2.000000e-01 : f32
    %6 = vector.broadcast %cst_5 : f32 to vector<32x256xf32>
    %7 = arith.subf %5, %6 : vector<32x256xf32>
    %cst_6 = arith.constant 0.000000e+00 : f32
    %8 = vector.broadcast %cst_6 : f32 to vector<32x256xf32>
    %9 = arith.maximumf %7, %8 : vector<32x256xf32>
    %cst_7 = arith.constant 0.000000e+00 : f32
    %cst_8 = arith.constant 1.000000e-01 : f32
    %10 = vector.broadcast %cst_7 : f32 to vector<32x256xf32>
    %11 = arith.maximumf %10, %5 : vector<32x256xf32>
    %12 = vector.broadcast %cst_8 : f32 to vector<32x256xf32>
    %13 = arith.minimumf %12, %11 : vector<32x256xf32>
    %14 = arith.subf %9, %13 : vector<32x256xf32>
    %c0_9 = arith.constant 0 : index
    %c0_10 = arith.constant 0 : index
    %c0_11 = arith.constant 0 : index
    %15 = vector.load %arg4[%c0_9, %c0_10, %c0_11] : memref<3x32x32xbf16, #tpu.memory_space<vmem>>, vector<1x32x32xbf16>
    %16 = vector.shape_cast %15 : vector<1x32x32xbf16> to vector<32x32xbf16>
    %17 = arith.truncf %14 : vector<32x256xf32> to vector<32x256xbf16>
    %cst_12 = arith.constant dense<0.000000e+00> : vector<32x256xf32>
    %18 = tpu.matmul %16, %17, %cst_12 {dimension_numbers = #tpu.dot_dimension_numbers<[1], [0], [0], [1], [0, 0, 1, 1], [], []>} : vector<32x32xbf16>, vector<32x256xbf16>, vector<32x256xf32> -> vector<32x256xf32>
    %c0_13 = arith.constant 0 : index
    %c0_14 = arith.constant 0 : index
    %c0_15 = arith.constant 0 : index
    %19 = vector.load %arg5[%c0_13, %c0_14, %c0_15] : memref<3x32x1xf32, #tpu.memory_space<vmem>>, vector<1x32x1xf32>
    %20 = vector.shape_cast %19 : vector<1x32x1xf32> to vector<32x1xf32>
    %21 = vector.broadcast %20 : vector<32x1xf32> to vector<32x256xf32>
    %22 = arith.addf %18, %21 : vector<32x256xf32>
    %cst_16 = arith.constant 2.000000e-01 : f32
    %23 = vector.broadcast %cst_16 : f32 to vector<32x256xf32>
    %24 = arith.subf %22, %23 : vector<32x256xf32>
    %cst_17 = arith.constant 0.000000e+00 : f32
    %25 = vector.broadcast %cst_17 : f32 to vector<32x256xf32>
    %26 = arith.maximumf %24, %25 : vector<32x256xf32>
    %cst_18 = arith.constant 0.000000e+00 : f32
    %cst_19 = arith.constant 1.000000e-01 : f32
    %27 = vector.broadcast %cst_18 : f32 to vector<32x256xf32>
    %28 = arith.maximumf %27, %22 : vector<32x256xf32>
    %29 = vector.broadcast %cst_19 : f32 to vector<32x256xf32>
    %30 = arith.minimumf %29, %28 : vector<32x256xf32>
    %31 = arith.subf %26, %30 : vector<32x256xf32>
    %c1 = arith.constant 1 : index
    %c0_20 = arith.constant 0 : index
    %c0_21 = arith.constant 0 : index
    %32 = vector.load %arg4[%c1, %c0_20, %c0_21] : memref<3x32x32xbf16, #tpu.memory_space<vmem>>, vector<1x32x32xbf16>
    %33 = vector.shape_cast %32 : vector<1x32x32xbf16> to vector<32x32xbf16>
    %34 = arith.truncf %31 : vector<32x256xf32> to vector<32x256xbf16>
    %cst_22 = arith.constant dense<0.000000e+00> : vector<32x256xf32>
    %35 = tpu.matmul %33, %34, %cst_22 {dimension_numbers = #tpu.dot_dimension_numbers<[1], [0], [0], [1], [0, 0, 1, 1], [], []>} : vector<32x32xbf16>, vector<32x256xbf16>, vector<32x256xf32> -> vector<32x256xf32>
    %c1_23 = arith.constant 1 : index
    %c0_24 = arith.constant 0 : index
    %c0_25 = arith.constant 0 : index
    %36 = vector.load %arg5[%c1_23, %c0_24, %c0_25] : memref<3x32x1xf32, #tpu.memory_space<vmem>>, vector<1x32x1xf32>
    %37 = vector.shape_cast %36 : vector<1x32x1xf32> to vector<32x1xf32>
    %38 = vector.broadcast %37 : vector<32x1xf32> to vector<32x256xf32>
    %39 = arith.addf %35, %38 : vector<32x256xf32>
    %cst_26 = arith.constant 2.000000e-01 : f32
    %40 = vector.broadcast %cst_26 : f32 to vector<32x256xf32>
    %41 = arith.subf %39, %40 : vector<32x256xf32>
    %cst_27 = arith.constant 0.000000e+00 : f32
    %42 = vector.broadcast %cst_27 : f32 to vector<32x256xf32>
    %43 = arith.maximumf %41, %42 : vector<32x256xf32>
    %cst_28 = arith.constant 0.000000e+00 : f32
    %cst_29 = arith.constant 1.000000e-01 : f32
    %44 = vector.broadcast %cst_28 : f32 to vector<32x256xf32>
    %45 = arith.maximumf %44, %39 : vector<32x256xf32>
    %46 = vector.broadcast %cst_29 : f32 to vector<32x256xf32>
    %47 = arith.minimumf %46, %45 : vector<32x256xf32>
    %48 = arith.subf %43, %47 : vector<32x256xf32>
    %c2 = arith.constant 2 : index
    %c0_30 = arith.constant 0 : index
    %c0_31 = arith.constant 0 : index
    %49 = vector.load %arg4[%c2, %c0_30, %c0_31] : memref<3x32x32xbf16, #tpu.memory_space<vmem>>, vector<1x32x32xbf16>
    %50 = vector.shape_cast %49 : vector<1x32x32xbf16> to vector<32x32xbf16>
    %51 = arith.truncf %48 : vector<32x256xf32> to vector<32x256xbf16>
    %cst_32 = arith.constant dense<0.000000e+00> : vector<32x256xf32>
    %52 = tpu.matmul %50, %51, %cst_32 {dimension_numbers = #tpu.dot_dimension_numbers<[1], [0], [0], [1], [0, 0, 1, 1], [], []>} : vector<32x32xbf16>, vector<32x256xbf16>, vector<32x256xf32> -> vector<32x256xf32>
    %c2_33 = arith.constant 2 : index
    %c0_34 = arith.constant 0 : index
    %c0_35 = arith.constant 0 : index
    %53 = vector.load %arg5[%c2_33, %c0_34, %c0_35] : memref<3x32x1xf32, #tpu.memory_space<vmem>>, vector<1x32x1xf32>
    %54 = vector.shape_cast %53 : vector<1x32x1xf32> to vector<32x1xf32>
    %55 = vector.broadcast %54 : vector<32x1xf32> to vector<32x256xf32>
    %56 = arith.addf %52, %55 : vector<32x256xf32>
    %cst_36 = arith.constant 2.000000e-01 : f32
    %57 = vector.broadcast %cst_36 : f32 to vector<32x256xf32>
    %58 = arith.subf %56, %57 : vector<32x256xf32>
    %cst_37 = arith.constant 0.000000e+00 : f32
    %59 = vector.broadcast %cst_37 : f32 to vector<32x256xf32>
    %60 = arith.maximumf %58, %59 : vector<32x256xf32>
    %cst_38 = arith.constant 0.000000e+00 : f32
    %cst_39 = arith.constant 1.000000e-01 : f32
    %61 = vector.broadcast %cst_38 : f32 to vector<32x256xf32>
    %62 = arith.maximumf %61, %56 : vector<32x256xf32>
    %63 = vector.broadcast %cst_39 : f32 to vector<32x256xf32>
    %64 = arith.minimumf %63, %62 : vector<32x256xf32>
    %65 = arith.subf %60, %64 : vector<32x256xf32>
    %c0_40 = arith.constant 0 : index
    %c0_41 = arith.constant 0 : index
    %66 = vector.load %arg6[%c0_40, %c0_41] : memref<2x32xbf16, #tpu.memory_space<vmem>>, vector<2x32xbf16>
    %67 = arith.truncf %65 : vector<32x256xf32> to vector<32x256xbf16>
    %cst_42 = arith.constant dense<0.000000e+00> : vector<2x256xf32>
    %68 = tpu.matmul %66, %67, %cst_42 {dimension_numbers = #tpu.dot_dimension_numbers<[1], [0], [0], [1], [0, 0, 1, 1], [], []>} : vector<2x32xbf16>, vector<32x256xbf16>, vector<2x256xf32> -> vector<2x256xf32>
    %c0_43 = arith.constant 0 : index
    %c0_44 = arith.constant 0 : index
    %69 = vector.load %arg7[%c0_43, %c0_44] : memref<2x1xf32, #tpu.memory_space<vmem>>, vector<2x1xf32>
    %70 = vector.broadcast %69 : vector<2x1xf32> to vector<2x256xf32>
    %71 = arith.addf %68, %70 : vector<2x256xf32>
    %c0_45 = arith.constant 0 : index
    %c0_46 = arith.constant 0 : index
    %72 = vector.load %arg8[%c0_45, %c0_46] : memref<2x256xf32, #tpu.memory_space<vmem>>, vector<2x256xf32>
    tpu.vector_store %arg8[%c0_45, %c0_46], %71 {strides = array<i32>} : memref<2x256xf32, #tpu.memory_space<vmem>>, vector<2x256xf32>,
    return
  }
  func.func @transform_0(%arg0: i32) -> (i32, i32) {
    %c0_i32 = arith.constant 0 : i32
    %c0_i32_0 = arith.constant 0 : i32
    return %c0_i32, %arg0 : i32, i32
  }
  func.func @transform_1(%arg0: i32) -> (i32, i32) {
    %c0_i32 = arith.constant 0 : i32
    %c0_i32_0 = arith.constant 0 : i32
    %c0_i32_1 = arith.constant 0 : i32
    return %c0_i32, %c0_i32_0 : i32, i32
  }
  func.func @transform_2(%arg0: i32) -> (i32, i32) {
    %c0_i32 = arith.constant 0 : i32
    %c0_i32_0 = arith.constant 0 : i32
    %c0_i32_1 = arith.constant 0 : i32
    return %c0_i32, %c0_i32_0 : i32, i32
  }
  func.func @transform_3(%arg0: i32) -> (i32, i32, i32) {
    %c0_i32 = arith.constant 0 : i32
    %c0_i32_0 = arith.constant 0 : i32
    %c0_i32_1 = arith.constant 0 : i32
    %c0_i32_2 = arith.constant 0 : i32
    return %c0_i32, %c0_i32_0, %c0_i32_1 : i32, i32, i32
  }
  func.func @transform_4(%arg0: i32) -> (i32, i32, i32) {
    %c0_i32 = arith.constant 0 : i32
    %c0_i32_0 = arith.constant 0 : i32
    %c0_i32_1 = arith.constant 0 : i32
    %c0_i32_2 = arith.constant 0 : i32
    return %c0_i32, %c0_i32_0, %c0_i32_1 : i32, i32, i32
  }
  func.func @transform_5(%arg0: i32) -> (i32, i32) {
    %c0_i32 = arith.constant 0 : i32
    %c0_i32_0 = arith.constant 0 : i32
    %c0_i32_1 = arith.constant 0 : i32
    return %c0_i32, %c0_i32_0 : i32, i32
  }
  func.func @transform_6(%arg0: i32) -> (i32, i32) {
    %c0_i32 = arith.constant 0 : i32
    %c0_i32_0 = arith.constant 0 : i32
    %c0_i32_1 = arith.constant 0 : i32
    return %c0_i32, %c0_i32_0 : i32, i32
  }
  func.func @transform_7(%arg0: i32) -> (i32, i32) {
    %c0_i32 = arith.constant 0 : i32
    %c0_i32_0 = arith.constant 0 : i32
    return %c0_i32, %arg0 : i32, i32
  }
}

</mosaic_0001>

<bundles_post_ra>
// kernel: tpu_custom_call.1
= control target key start
LH: loop header
LB: loop body
LE: loop exit
PB: predicated region body
PF: predicated region fallthrough
CT: control target
= control target key end

     0   :  { %12 = vsyncpa [#allocation3], 0  ;;  %s1365_s0 = inlined_call_operand.vmem [shape: bf16[4,512], index: 0, kind: input, shape index: {}]   ;;  %s1366_s1 = inlined_call_operand.vmem [shape: bf16[32,4], index: 1, kind: input, shape index: {}]   ;;  %s1367_s2 = inlined_call_operand.vmem [shape: f32[32,1], index: 2, kind: input, shape index: {}]   ;;  %s1368_s3 = inlined_call_operand.vmem [shape: bf16[3,32,32], index: 3, kind: input, shape index: {}]   ;;  %s1369_s4 = inlined_call_operand.vmem [shape: f32[3,32,1], index: 4, kind: input, shape index: {}]   ;;  %s1370_s5 = inlined_call_operand.vmem [shape: bf16[2,32], index: 5, kind: input, shape index: {}]   ;;  %s1371_s6 = inlined_call_operand.vmem [shape: f32[2,1], index: 6, kind: input, shape index: {}]   ;;  %s1372_s7 = inlined_call_operand.hbm [shape: f32[2,512], index: 7, kind: output, shape index: {}]  }
   0x1   :  { %14 = vsyncpa [#allocation3 + $0x1], 0  ;;  %s1186_s24 = smov 0   ;;  %s1188_s25 = smov 0  }
   0x2   :  { %s1190_s26 = smov 0   ;;  %s1192_s27 = smov 0  }
   0x3 LB: > { %s1207_s28 = sadd.s32 4294967295, %s1143_s27   ;;  %s919_s29 = sadd.s32 4294967294, %s1143_s27   ;;  %s1143_s27 = sphi %s1192_s27, %s1378_s27   ;;  %s1139_s26 = sphi %s1190_s26, %s1377_s26   ;;  %s1135_s25 = sphi %s1188_s25, %s1376_s25   ;;  %s1131_s24 = sphi %s1186_s24, %s1375_s24  }
   0x4   : > { %s1211_s30 = sadd.s32 1, %s1143_s27   ;;  %s179_s8 = sadd.s32 1, %s1139_s26 }
   0x5   : > { %s176_s9 = ssub.s32 %s1143_s27, %s1211_s30  ;;  %p189_p0 = scmp.ne.s32.totalorder %s1139_s26, %s1135_s25 }
   0x6   : > { %p177_p1 = scmp.eq.s32.totalorder %s176_s9, 0  ;;  %p190_p2 = scmp.eq.s32.totalorder %s1207_s28, 1 }
   0x7   : > { %p195_p3 = scmp.ne.s32.totalorder %s1135_s25, %s1131_s24  ;;  %p196_p4 = scmp.eq.s32.totalorder %s919_s29, 1 }
   0x8   : > { %s1222_s10 = scalar_select %p177_p1, %s1139_s26, %s179_s8  }
   0x9   : > { %p1224_p5 = por %p190_p2, %p189_p0  ;;  %p1228_p6 = por %p196_p4, %p195_p3 }
   0xa   : > { %p922_p7 = scmp.ge.s32.totalorder %s1143_s27, 1  ;;  %p241_p8 = scmp.lt.s32.totalorder %s1143_s27, 3 }
   0xc   : > { %p242_p9 = pnand %p922_p7, %p241_p8 }
   0xd   : > { %s924_s17 = sshll.u32 (!%p242_p9), %s1207_s28, 1  ;;  %s270_s14 = sand.u32 (!%p242_p9), 1, %s1135_s25  }
   0xe   : > { %245 = sbr.rel (%p242_p9) target bundleno = 849 (0x351), region = 48  ;;  %p274_p10 = scmp.lt.s32.totalorder (!%p242_p9), %s924_s17, 3 }
   0xf   : > { %s923_s15 = sshll.u32 (!%p242_p9), %s270_s14, 2  ;;  %s1037_s16 = sshll.u32 (!%p242_p9), %s1207_s28, 2 }
  0x10   : > { %s855_s19 = scalar_lea.hbm (!%p242_p9), %s1372_s7, %s1037_s16  ;;  %s272_s20 = scalar_lea.vmem (!%p242_p9), [#allocation2], %s923_s15 }
  0x11   : > { %s859_s22 = sshll.u32 (!%p242_p9), %s855_s19, 4  ;;  %s844_s28 = scalar_lea.sflag (!%p242_p9), [#allocation3], %s270_s14  ;;  %s860_s22 = int_to_ptr.hbm [resolvable:$true] %s859_s22 }
  0x12   : > { %s1095_s23 = sshra.s32 (!%p242_p9), %s860_s22, 4  ;;  %s1101_s13 = scalar_lea.hbm (!%p242_p9), %s1372_s7, 8  ;;  %s1096_s23 = int_to_ptr.hbm [resolvable:$true] %s1095_s23 }
  0x13   : > { %v288_v0 = vld [vmem:[%s1367_s2 + $0x10] sm:$0xff]  ;;  %v286_v1 = vld [vmem:[%s1367_s2] sm:$0xff]  ;;  %v1145_v2 = vmov 0   ;;  %s1380_s17 = smov (!%p274_p10, %s924_s17), 3  ;;  %v289_v3 = vld [vmem:[%s1367_s2 + $0x18] sm:$0xff]  ;;  %vm331_vm0 = vcmask 1041408   ;;  %p1102_p0 = scmp.lt.s32.totalorder %s1096_s23, %s1372_s7 }
  0x14   : > { %1078 = vset.pattern.permute.xlu0 %v1145_v2  ;;  %1079 = vset.pattern.permute.xlu1 %v1145_v2  ;;  %s925_s18 = sshll.u32 %s1380_s17, 1  ;;  %v287_v5 = vld [vmem:[%s1367_s2 + $0x8] sm:$0xff]  ;;  %v422_v6 = vld [vmem:[%s1369_s4] sm:$0xff]  ;;  %vm324_vm1 = vcmask 31744   ;;  %v973_v13 = vld [vmem:[%s1369_s4 + $0x38] sm:$0xff]  ;;  %vm456_vm2 = vcmask 261120  }
  0x15   : > { %302 = vperm.xlu0 %1078, %v288_v0   ;;  %292 = vperm.xlu1 %1079, %v286_v1   ;;  %s277_s21 = scalar_lea.vmem %s1365_s0, %s925_s18  ;;  %v423_v7 = vld [vmem:[%s1369_s4 + $0x8] sm:$0xff]  ;;  %v1029_v12 = vld [vmem:[%s1366_s1] sm:$0xff]  ;;  %v1000_v15 = vld [vmem:[%s1369_s4 + $0x50] sm:$0xff]  ;;  %s1097_s29 = scalar_lea.hbm %s1096_s23, 4 }
  0x16   : > { %1080 = vset.pattern.permute.xlu2 %v1145_v2  ;;  %v285_v4 = vld [vmem:[%s277_s21] sm:$0xf]  ;;  %v1001_v16 = vld [vmem:[%s1369_s4 + $0x58] sm:$0xff]  ;;  %v1030_v17 = vld [vmem:[%s1366_s1 + $0x8] sm:$0xff]  ;;  %s857_s21 = sshll.u32 %s272_s20, 4  ;;  %p1098_p11 = scmp.ne.s32.totalorder %s1096_s23, %s1097_s29  ;;  %s858_s21 = int_to_ptr.vmem [resolvable:$true] %s857_s21 }
  0x17   : > { %321 = vst [vmem:[#allocation1] ss:$4 sm:$0xff] %v285_v4  ;;  %v970_v14 = vld [vmem:[%s1369_s4 + $0x20] sm:$0xff]  ;;  %v999_v18 = vld [vmem:[%s1369_s4 + $0x48] sm:$0xff]  ;;  %v424_v56 = vld [vmem:[%s1369_s4 + $0x10] sm:$0xff]  ;;  %p1103_p1 = scmp.lt.s32.totalorder %s1101_s13, %s1097_s29 }
  0x18   : > { %v802_v19 = vld [vmem:[%s1371_s6] sm:$0x3]  ;;  %438 = vperm.xlu2 %1080, %v424_v56   ;;  %p1099_p12 = pnand %p1098_p11, %p1224_p5 }
  0x19   : > { %p1104_p2 = por %p1103_p1, %p1102_p0 }
  0x1a   : > { %p1100_p13 = pneg %p1099_p12 }
  0x1c   : > { %p1105_p3 = pnand %p1104_p2, %p1100_p13 }
  0x1d   : > { %307 = vperm.xlu0 %1078, %v289_v3   ;;  %297 = vperm.xlu1 %1079, %v287_v5  }
  0x1e   : > { %v322_v8 = vld.sshfl [vmem:[#allocation1] sm:$0xff pattern:$0x73625140]  ;;  %v323_v9 = vld.sshfl [vmem:[#allocation1 + $0x8] sm:$0xff pattern:$0x73625140] }
  0x1f   : > { %v332_v10 = vsel %vm331_vm0, %v322_v8, 0  ;;  %v334_v11 = vsel %vm331_vm0, %v323_v9, 0 }
  0x20   : > { %343 = vmatpush.bf16.msra.mxu0 %v332_v10  ;;  %362 = vmatpush.bf16.msra.mxu1 %v334_v11 }
  0x23   : > { %934 = vmatmul.msk.bf16.vlgmr.msra.gmra.mxu0 %vm324_vm1, %v1029_v12  ;;  %936 = vmatmul.msk.bf16.vlgmr.msra.gmra.mxu1 %vm324_vm1, %v1029_v12 }
  0x25   : > { %428 = vperm.xlu0 %1078, %v422_v6   ;;  %433 = vperm.xlu1 %1079, %v423_v7  }
  0x2d   : > { %572 = vperm.xlu0 %1078, %v973_v13   ;;  %557 = vperm.xlu1 %1079, %v970_v14  }
  0x33   : > { %935 = vmatmul.msk.bf16.gmra.mxu0 %vm324_vm1, %v1030_v17  ;;  %937 = vmatmul.msk.bf16.gmra.mxu1 %vm324_vm1, %v1030_v17  ;;  %v425_v17 = vld [vmem:[%s1369_s4 + $0x18] sm:$0xff] }
  0x34   : > { %443 = vperm.xlu2 %1080, %v425_v17  }
  0x35   : > { %695 = vperm.xlu0 %1078, %v1000_v15   ;;  %700 = vperm.xlu1 %1079, %v1001_v16  }
  0x3d   : > { %690 = vperm.xlu0 %1078, %v999_v18   ;;  %805 = vperm.xlu1 %1079, %v802_v19  }
  0x87   : > { %v293_v24 = vpop.permute.xlu1 %292  ;;  %v303_v25 = vpop.permute.xlu0 %302 }
  0x8f   : > { %v298_v30 = vpop.permute.xlu1 %297  ;;  %v308_v39 = vpop.permute.xlu0 %307 }
  0xa0   : > { %v345_v20 = vpop.f32.mrf.mxu0  ;;  %v364_v21 = vpop.f32.mrf.mxu1 }
  0xa1   : > { %v346_v31 = vadd.f32 %v345_v20, %v293_v24  ;;  %v365_v32 = vadd.f32 %v364_v21, %v293_v24  ;;  %v971_v24 = vld [vmem:[%s1369_s4 + $0x28] sm:$0xff] }
  0xa3   : > { %v938_v40 = vadd.f32 -0.2, %v346_v31  ;;  %v390_v41 = vmax.f32 %v346_v31, 0.0  ;;  %v939_v42 = vadd.f32 -0.2, %v365_v32  ;;  %v391_v49 = vmax.f32 %v365_v32, 0.0  ;;  %v439_v31 = vpop.permute.xlu2 %438 }
  0xa5   : > { %v382_v5 = vmax.f32 %v938_v40, 0.0  ;;  %v398_v6 = vmin.f32 %v390_v41, 0.1  ;;  %v383_v7 = vmax.f32 %v939_v42, 0.0  ;;  %v399_v8 = vmin.f32 %v391_v49, 0.1 }
  0xa7   : > { %v406_v18 = vsub.f32 %v382_v5, %v398_v6  ;;  %v407_v19 = vsub.f32 %v383_v7, %v399_v8 }
  0xa8   : > { %v347_v22 = vpop.f32.mrf.mxu0  ;;  %v366_v23 = vpop.f32.mrf.mxu1 }
  0xa9   : > { %v348_v33 = vadd.f32 %v347_v22, %v298_v30  ;;  %v367_v34 = vadd.f32 %v366_v23, %v298_v30  ;;  %v1031_v22 = vld [vmem:[%s1368_s3] sm:$0xff]  ;;  %v972_v23 = vld [vmem:[%s1369_s4 + $0x30] sm:$0xff] }
  0xaa   : > { %567 = vperm.xlu2 %1080, %v972_v23  }
  0xab   : > { %v940_v43 = vadd.f32 -0.2, %v348_v33  ;;  %v392_v44 = vmax.f32 %v348_v33, 0.0  ;;  %v941_v45 = vadd.f32 -0.2, %v367_v34  ;;  %v393_v46 = vmax.f32 %v367_v34, 0.0  ;;  %v429_v34 = vpop.permute.xlu0 %428 }
  0xad   : > { %v384_v61 = vmax.f32 %v940_v43, 0.0  ;;  %v400_v62 = vmin.f32 %v392_v44, 0.1  ;;  %v385_v63 = vmax.f32 %v941_v45, 0.0  ;;  %v401_v0 = vmin.f32 %v393_v46, 0.1  ;;  %v444_v46 = vpop.permute.xlu2 %443 }
  0xaf   : > { %v408_v15 = vsub.f32 %v384_v61, %v400_v62  ;;  %v409_v16 = vsub.f32 %v385_v63, %v401_v0 }
  0xb0   : > { %v350_v26 = vpop.f32.mrf.mxu0  ;;  %v369_v27 = vpop.f32.mrf.mxu1 }
  0xb1   : > { %v351_v28 = vadd.f32 %v350_v26, %v303_v25  ;;  %v370_v29 = vadd.f32 %v369_v27, %v303_v25  ;;  %v418_v20 = vpack.c.bf16 %v408_v15, %v406_v18  ;;  %v419_v21 = vpack.c.bf16 %v409_v16, %v407_v19  ;;  %v1032_v25 = vld [vmem:[%s1368_s3 + $0x8] sm:$0xff]  ;;  %v998_v26 = vld [vmem:[%s1369_s4 + $0x40] sm:$0xff] }
  0xb2   : > { %562 = vperm.xlu2 %1080, %v971_v24  }
  0xb3   : > { %v942_v35 = vadd.f32 -0.2, %v351_v28  ;;  %v394_v36 = vmax.f32 %v351_v28, 0.0  ;;  %v943_v37 = vadd.f32 -0.2, %v370_v29  ;;  %v395_v38 = vmax.f32 %v370_v29, 0.0 }
  0xb5   : > { %v386_v50 = vmax.f32 %v942_v35, 0.0  ;;  %v402_v53 = vmin.f32 %v394_v36, 0.1  ;;  %v387_v54 = vmax.f32 %v943_v37, 0.0  ;;  %v403_v55 = vmin.f32 %v395_v38, 0.1  ;;  %v434_v37 = vpop.permute.xlu1 %433 }
  0xb7   : > { %v410_v9 = vsub.f32 %v386_v50, %v402_v53  ;;  %v411_v11 = vsub.f32 %v387_v54, %v403_v55 }
  0xb8   : > { %v352_v47 = vpop.f32.mrf.mxu0  ;;  %v371_v48 = vpop.f32.mrf.mxu1 }
  0xb9   : > { %v353_v51 = vadd.f32 %v352_v47, %v308_v39  ;;  %v372_v52 = vadd.f32 %v371_v48, %v308_v39 }
  0xba   : > { %685 = vperm.xlu2 %1080, %v998_v26  }
  0xbb   : > { %v944_v57 = vadd.f32 -0.2, %v353_v51  ;;  %v396_v58 = vmax.f32 %v353_v51, 0.0  ;;  %v945_v59 = vadd.f32 -0.2, %v372_v52  ;;  %v397_v60 = vmax.f32 %v372_v52, 0.0 }
  0xbd   : > { %v388_v1 = vmax.f32 %v944_v57, 0.0  ;;  %v404_v2 = vmin.f32 %v396_v58, 0.1  ;;  %v389_v3 = vmax.f32 %v945_v59, 0.0  ;;  %v405_v4 = vmin.f32 %v397_v60, 0.1 }
  0xbf   : > { %v412_v10 = vsub.f32 %v388_v1, %v404_v2  ;;  %v413_v12 = vsub.f32 %v389_v3, %v405_v4 }
  0xc1   : > { %v420_v13 = vpack.c.bf16 %v412_v10, %v410_v9  ;;  %v421_v14 = vpack.c.bf16 %v413_v12, %v411_v11 }
  0xc3   : > { %469 = vmatpush.bf16.msra.mxu2 %v420_v13  ;;  %488 = vmatpush.bf16.msra.mxu3 %v421_v14 }
  0xc7   : > { %470 = vmatpush.bf16.msra.mxu2 %v418_v20  ;;  %489 = vmatpush.bf16.msra.mxu3 %v419_v21 }
  0xca   : > { %954 = vmatmul.msk.bf16.vlgmr.msra.gmra.mxu2 %vm456_vm2, %v1031_v22  ;;  %956 = vmatmul.msk.bf16.vlgmr.msra.gmra.mxu3 %vm456_vm2, %v1031_v22 }
  0xda   : > { %955 = vmatmul.msk.bf16.gmra.mxu2 %vm456_vm2, %v1032_v25  ;;  %957 = vmatmul.msk.bf16.gmra.mxu3 %vm456_vm2, %v1032_v25 }
 0x14d   : > { %v472_v27 = vpop.f32.mrf.mxu2  ;;  %v491_v28 = vpop.f32.mrf.mxu3 }
 0x14e   : > { %v473_v38 = vadd.f32 %v472_v27, %v429_v34  ;;  %v492_v41 = vadd.f32 %v491_v28, %v429_v34  ;;  %v1033_v27 = vld [vmem:[%s1368_s3 + $0x10] sm:$0xff]  ;;  %v1034_v28 = vld [vmem:[%s1368_s3 + $0x18] sm:$0xff] }
 0x150   : > { %v958_v47 = vadd.f32 -0.2, %v473_v38  ;;  %v517_v48 = vmax.f32 %v473_v38, 0.0  ;;  %v959_v55 = vadd.f32 -0.2, %v492_v41  ;;  %v518_v56 = vmax.f32 %v492_v41, 0.0 }
 0x152   : > { %v509_v11 = vmax.f32 %v958_v47, 0.0  ;;  %v525_v12 = vmin.f32 %v517_v48, 0.1  ;;  %v510_v13 = vmax.f32 %v959_v55, 0.0  ;;  %v526_v14 = vmin.f32 %v518_v56, 0.1  ;;  %v573_v48 = vpop.permute.xlu0 %572 }
 0x154   : > { %v533_v23 = vsub.f32 %v509_v11, %v525_v12  ;;  %v534_v24 = vsub.f32 %v510_v13, %v526_v14 }
 0x155   : > { %v474_v29 = vpop.f32.mrf.mxu2  ;;  %v493_v30 = vpop.f32.mrf.mxu3 }
 0x156   : > { %v475_v39 = vadd.f32 %v474_v29, %v434_v37  ;;  %v494_v40 = vadd.f32 %v493_v30, %v434_v37 }
 0x158   : > { %v960_v49 = vadd.f32 -0.2, %v475_v39  ;;  %v519_v50 = vmax.f32 %v475_v39, 0.0  ;;  %v961_v51 = vadd.f32 -0.2, %v494_v40  ;;  %v520_v52 = vmax.f32 %v494_v40, 0.0 }
 0x15a   : > { %v511_v3 = vmax.f32 %v960_v49, 0.0  ;;  %v527_v4 = vmin.f32 %v519_v50, 0.1  ;;  %v512_v5 = vmax.f32 %v961_v51, 0.0  ;;  %v528_v6 = vmin.f32 %v520_v52, 0.1 }
 0x15c   : > { %v535_v21 = vsub.f32 %v511_v3, %v527_v4  ;;  %v536_v22 = vsub.f32 %v512_v5, %v528_v6 }
 0x15d   : > { %v477_v32 = vpop.f32.mrf.mxu2  ;;  %v496_v33 = vpop.f32.mrf.mxu3 }
 0x15e   : > { %v478_v35 = vadd.f32 %v477_v32, %v439_v31  ;;  %v497_v36 = vadd.f32 %v496_v33, %v439_v31  ;;  %v546_v25 = vpack.c.bf16 %v535_v21, %v533_v23  ;;  %v547_v26 = vpack.c.bf16 %v536_v22, %v534_v24  ;;  %v568_v33 = vpop.permute.xlu2 %567 }
 0x160   : > { %v962_v42 = vadd.f32 -0.2, %v478_v35  ;;  %v521_v43 = vmax.f32 %v478_v35, 0.0  ;;  %v963_v44 = vadd.f32 -0.2, %v497_v36  ;;  %v522_v45 = vmax.f32 %v497_v36, 0.0  ;;  %v558_v36 = vpop.permute.xlu1 %557 }
 0x162   : > { %v513_v59 = vmax.f32 %v962_v42, 0.0  ;;  %v529_v60 = vmin.f32 %v521_v43, 0.1  ;;  %v514_v61 = vmax.f32 %v963_v44, 0.0  ;;  %v530_v62 = vmin.f32 %v522_v45, 0.1 }
 0x164   : > { %v537_v15 = vsub.f32 %v513_v59, %v529_v60  ;;  %v538_v17 = vsub.f32 %v514_v61, %v530_v62 }
 0x165   : > { %v479_v53 = vpop.f32.mrf.mxu2  ;;  %v498_v54 = vpop.f32.mrf.mxu3 }
 0x166   : > { %v480_v57 = vadd.f32 %v479_v53, %v444_v46  ;;  %v499_v58 = vadd.f32 %v498_v54, %v444_v46  ;;  %v563_v39 = vpop.permute.xlu2 %562 }
 0x168   : > { %v964_v63 = vadd.f32 -0.2, %v480_v57  ;;  %v523_v0 = vmax.f32 %v480_v57, 0.0  ;;  %v965_v1 = vadd.f32 -0.2, %v499_v58  ;;  %v524_v2 = vmax.f32 %v499_v58, 0.0 }
 0x16a   : > { %v515_v7 = vmax.f32 %v964_v63, 0.0  ;;  %v531_v8 = vmin.f32 %v523_v0, 0.1  ;;  %v516_v9 = vmax.f32 %v965_v1, 0.0  ;;  %v532_v10 = vmin.f32 %v524_v2, 0.1 }
 0x16c   : > { %v539_v16 = vsub.f32 %v515_v7, %v531_v8  ;;  %v540_v18 = vsub.f32 %v516_v9, %v532_v10 }
 0x16e   : > { %v548_v19 = vpack.c.bf16 %v539_v16, %v537_v15  ;;  %v549_v20 = vpack.c.bf16 %v540_v18, %v538_v17 }
 0x170   : > { %597 = vmatpush.bf16.msrb.mxu0 %v548_v19  ;;  %616 = vmatpush.bf16.msrb.mxu1 %v549_v20 }
 0x174   : > { %598 = vmatpush.bf16.msrb.mxu0 %v546_v25  ;;  %617 = vmatpush.bf16.msrb.mxu1 %v547_v26 }
 0x177   : > { %982 = vmatmul.msk.bf16.vlgmr.msrb.gmra.mxu0 %vm456_vm2, %v1033_v27  ;;  %984 = vmatmul.msk.bf16.vlgmr.msrb.gmra.mxu1 %vm456_vm2, %v1033_v27 }
 0x187   : > { %983 = vmatmul.msk.bf16.gmra.mxu0 %vm456_vm2, %v1034_v28  ;;  %985 = vmatmul.msk.bf16.gmra.mxu1 %vm456_vm2, %v1034_v28 }
 0x1f4   : > { %v600_v29 = vpop.f32.mrf.mxu0  ;;  %v619_v30 = vpop.f32.mrf.mxu1 }
 0x1f5   : > { %v601_v40 = vadd.f32 %v600_v29, %v558_v36  ;;  %v620_v43 = vadd.f32 %v619_v30, %v558_v36  ;;  %v1035_v29 = vld [vmem:[%s1368_s3 + $0x20] sm:$0xff]  ;;  %v1036_v30 = vld [vmem:[%s1368_s3 + $0x28] sm:$0xff] }
 0x1f7   : > { %v986_v49 = vadd.f32 -0.2, %v601_v40  ;;  %v645_v50 = vmax.f32 %v601_v40, 0.0  ;;  %v987_v57 = vadd.f32 -0.2, %v620_v43  ;;  %v646_v58 = vmax.f32 %v620_v43, 0.0 }
 0x1f9   : > { %v637_v13 = vmax.f32 %v986_v49, 0.0  ;;  %v653_v14 = vmin.f32 %v645_v50, 0.1  ;;  %v638_v15 = vmax.f32 %v987_v57, 0.0  ;;  %v654_v16 = vmin.f32 %v646_v58, 0.1  ;;  %v701_v50 = vpop.permute.xlu1 %700 }
 0x1fb   : > { %v661_v25 = vsub.f32 %v637_v13, %v653_v14  ;;  %v662_v26 = vsub.f32 %v638_v15, %v654_v16 }
 0x1fc   : > { %v602_v31 = vpop.f32.mrf.mxu0  ;;  %v621_v32 = vpop.f32.mrf.mxu1 }
 0x1fd   : > { %v603_v41 = vadd.f32 %v602_v31, %v563_v39  ;;  %v622_v42 = vadd.f32 %v621_v32, %v563_v39 }
 0x1ff   : > { %v988_v51 = vadd.f32 -0.2, %v603_v41  ;;  %v647_v52 = vmax.f32 %v603_v41, 0.0  ;;  %v989_v53 = vadd.f32 -0.2, %v622_v42  ;;  %v648_v54 = vmax.f32 %v622_v42, 0.0 }
 0x201   : > { %v639_v5 = vmax.f32 %v988_v51, 0.0  ;;  %v655_v6 = vmin.f32 %v647_v52, 0.1  ;;  %v640_v7 = vmax.f32 %v989_v53, 0.0  ;;  %v656_v8 = vmin.f32 %v648_v54, 0.1 }
 0x203   : > { %v663_v23 = vsub.f32 %v639_v5, %v655_v6  ;;  %v664_v24 = vsub.f32 %v640_v7, %v656_v8 }
 0x204   : > { %v605_v34 = vpop.f32.mrf.mxu0  ;;  %v624_v35 = vpop.f32.mrf.mxu1 }
 0x205   : > { %v606_v37 = vadd.f32 %v605_v34, %v568_v33  ;;  %v625_v38 = vadd.f32 %v624_v35, %v568_v33  ;;  %v674_v27 = vpack.c.bf16 %v663_v23, %v661_v25  ;;  %v675_v28 = vpack.c.bf16 %v664_v24, %v662_v26  ;;  %v696_v35 = vpop.permute.xlu0 %695 }
 0x207   : > { %v990_v44 = vadd.f32 -0.2, %v606_v37  ;;  %v649_v45 = vmax.f32 %v606_v37, 0.0  ;;  %v991_v46 = vadd.f32 -0.2, %v625_v38  ;;  %v650_v47 = vmax.f32 %v625_v38, 0.0  ;;  %v686_v38 = vpop.permute.xlu2 %685 }
 0x209   : > { %v641_v61 = vmax.f32 %v990_v44, 0.0  ;;  %v657_v62 = vmin.f32 %v649_v45, 0.1  ;;  %v642_v63 = vmax.f32 %v991_v46, 0.0  ;;  %v658_v0 = vmin.f32 %v650_v47, 0.1 }
 0x20b   : > { %v665_v17 = vsub.f32 %v641_v61, %v657_v62  ;;  %v666_v19 = vsub.f32 %v642_v63, %v658_v0 }
 0x20c   : > { %v607_v55 = vpop.f32.mrf.mxu0  ;;  %v626_v56 = vpop.f32.mrf.mxu1 }
 0x20d   : > { %v608_v59 = vadd.f32 %v607_v55, %v573_v48  ;;  %v627_v60 = vadd.f32 %v626_v56, %v573_v48  ;;  %v691_v41 = vpop.permute.xlu0 %690 }
 0x20f   : > { %v992_v1 = vadd.f32 -0.2, %v608_v59  ;;  %v651_v2 = vmax.f32 %v608_v59, 0.0  ;;  %v993_v3 = vadd.f32 -0.2, %v627_v60  ;;  %v652_v4 = vmax.f32 %v627_v60, 0.0 }
 0x211   : > { %v643_v9 = vmax.f32 %v992_v1, 0.0  ;;  %v659_v10 = vmin.f32 %v651_v2, 0.1  ;;  %v644_v11 = vmax.f32 %v993_v3, 0.0  ;;  %v660_v12 = vmin.f32 %v652_v4, 0.1 }
 0x213   : > { %v667_v18 = vsub.f32 %v643_v9, %v659_v10  ;;  %v668_v20 = vsub.f32 %v644_v11, %v660_v12 }
 0x215   : > { %v676_v21 = vpack.c.bf16 %v667_v18, %v665_v17  ;;  %v677_v22 = vpack.c.bf16 %v668_v20, %v666_v19 }
 0x217   : > { %725 = vmatpush.bf16.msrb.mxu2 %v676_v21  ;;  %744 = vmatpush.bf16.msrb.mxu3 %v677_v22 }
 0x21b   : > { %726 = vmatpush.bf16.msrb.mxu2 %v674_v27  ;;  %745 = vmatpush.bf16.msrb.mxu3 %v675_v28 }
 0x21e   : > { %1010 = vmatmul.msk.bf16.vlgmr.msrb.gmra.mxu2 %vm456_vm2, %v1035_v29  ;;  %1012 = vmatmul.msk.bf16.vlgmr.msrb.gmra.mxu3 %vm456_vm2, %v1035_v29 }
 0x22e   : > { %1011 = vmatmul.msk.bf16.gmra.mxu2 %vm456_vm2, %v1036_v30  ;;  %1013 = vmatmul.msk.bf16.gmra.mxu3 %vm456_vm2, %v1036_v30 }
 0x2a1   : > { %v728_v31 = vpop.f32.mrf.mxu2  ;;  %v747_v32 = vpop.f32.mrf.mxu3 }
 0x2a2   : > { %v729_v42 = vadd.f32 %v728_v31, %v686_v38  ;;  %v748_v45 = vadd.f32 %v747_v32, %v686_v38  ;;  %v797_v31 = vld [vmem:[%s1370_s5] sm:$0x1]  ;;  %v806_v32 = vpop.permute.xlu1 %805 }
 0x2a4   : > { %v1014_v51 = vadd.f32 -0.2, %v729_v42  ;;  %v773_v52 = vmax.f32 %v729_v42, 0.0  ;;  %v1015_v59 = vadd.f32 -0.2, %v748_v45  ;;  %v774_v60 = vmax.f32 %v748_v45, 0.0 }
 0x2a6   : > { %v765_v15 = vmax.f32 %v1014_v51, 0.0  ;;  %v781_v16 = vmin.f32 %v773_v52, 0.1  ;;  %v766_v17 = vmax.f32 %v1015_v59, 0.0  ;;  %v782_v18 = vmin.f32 %v774_v60, 0.1 }
 0x2a8   : > { %v789_v27 = vsub.f32 %v765_v15, %v781_v16  ;;  %v790_v28 = vsub.f32 %v766_v17, %v782_v18 }
 0x2a9   : > { %v730_v33 = vpop.f32.mrf.mxu2  ;;  %v749_v34 = vpop.f32.mrf.mxu3 }
 0x2aa   : > { %v731_v43 = vadd.f32 %v730_v33, %v691_v41  ;;  %v750_v44 = vadd.f32 %v749_v34, %v691_v41 }
 0x2ac   : > { %v1016_v53 = vadd.f32 -0.2, %v731_v43  ;;  %v775_v54 = vmax.f32 %v731_v43, 0.0  ;;  %v1017_v55 = vadd.f32 -0.2, %v750_v44  ;;  %v776_v56 = vmax.f32 %v750_v44, 0.0 }
 0x2ae   : > { %v767_v7 = vmax.f32 %v1016_v53, 0.0  ;;  %v783_v8 = vmin.f32 %v775_v54, 0.1  ;;  %v768_v9 = vmax.f32 %v1017_v55, 0.0  ;;  %v784_v10 = vmin.f32 %v776_v56, 0.1 }
 0x2b0   : > { %v791_v23 = vsub.f32 %v767_v7, %v783_v8  ;;  %v792_v24 = vsub.f32 %v768_v9, %v784_v10 }
 0x2b1   : > { %v733_v36 = vpop.f32.mrf.mxu2  ;;  %v752_v37 = vpop.f32.mrf.mxu3 }
 0x2b2   : > { %v734_v39 = vadd.f32 %v733_v36, %v696_v35  ;;  %v753_v40 = vadd.f32 %v752_v37, %v696_v35  ;;  %v798_v29 = vpack.c.bf16 %v791_v23, %v789_v27  ;;  %v799_v30 = vpack.c.bf16 %v792_v24, %v790_v28 }
 0x2b4   : > { %v1018_v46 = vadd.f32 -0.2, %v734_v39  ;;  %v777_v47 = vmax.f32 %v734_v39, 0.0  ;;  %v1019_v48 = vadd.f32 -0.2, %v753_v40  ;;  %v778_v49 = vmax.f32 %v753_v40, 0.0 }
 0x2b6   : > { %v769_v63 = vmax.f32 %v1018_v46, 0.0  ;;  %v785_v0 = vmin.f32 %v777_v47, 0.1  ;;  %v770_v1 = vmax.f32 %v1019_v48, 0.0  ;;  %v786_v2 = vmin.f32 %v778_v49, 0.1 }
 0x2b8   : > { %v793_v19 = vsub.f32 %v769_v63, %v785_v0  ;;  %v794_v20 = vsub.f32 %v770_v1, %v786_v2 }
 0x2b9   : > { %v735_v57 = vpop.f32.mrf.mxu2  ;;  %v754_v58 = vpop.f32.mrf.mxu3 }
 0x2ba   : > { %v736_v61 = vadd.f32 %v735_v57, %v701_v50  ;;  %v755_v62 = vadd.f32 %v754_v58, %v701_v50 }
 0x2bc   : > { %v1020_v3 = vadd.f32 -0.2, %v736_v61  ;;  %v779_v4 = vmax.f32 %v736_v61, 0.0  ;;  %v1021_v5 = vadd.f32 -0.2, %v755_v62  ;;  %v780_v6 = vmax.f32 %v755_v62, 0.0 }
 0x2be   : > { %v771_v11 = vmax.f32 %v1020_v3, 0.0  ;;  %v787_v12 = vmin.f32 %v779_v4, 0.1  ;;  %v772_v13 = vmax.f32 %v1021_v5, 0.0  ;;  %v788_v14 = vmin.f32 %v780_v6, 0.1 }
 0x2c0   : > { %v795_v21 = vsub.f32 %v771_v11, %v787_v12  ;;  %v796_v22 = vsub.f32 %v772_v13, %v788_v14 }
 0x2c2   : > { %v800_v25 = vpack.c.bf16 %v795_v21, %v793_v19  ;;  %v801_v26 = vpack.c.bf16 %v796_v22, %v794_v20 }
 0x2c4   : > { %817 = vmatpush.bf16.msra.mxu0 %v800_v25  ;;  %830 = vmatpush.bf16.msra.mxu1 %v801_v26 }
 0x2c8   : > { %818 = vmatpush.bf16.msra.mxu0 %v798_v29  ;;  %831 = vmatpush.bf16.msra.mxu1 %v799_v30 }
 0x2cb   : > { %1022 = vmatmul.msk.bf16.vlgmr.msra.gmra.mxu0 %vm456_vm2, %v797_v31  ;;  %1023 = vmatmul.msk.bf16.vlgmr.msra.gmra.mxu1 %vm456_vm2, %v797_v31 }
 0x348   : > { %v820_v33 = vpop.f32.mrf.mxu0  ;;  %v833_v34 = vpop.f32.mrf.mxu1 }
 0x349   : > { %v834_v35 = vadd.f32 %v833_v34, %v806_v32  ;;  %v821_v36 = vadd.f32 %v820_v33, %v806_v32 }
 0x34b   : > { %v839_v37 = vrot.slane %v834_v35, 6 }
 0x34d   : > { %v840_v38 = vsel %vm331_vm0, %v821_v36, %v839_v37 }
 0x34e   : > { %842 = vst [vmem:[%s272_s20] sm:$0xf] %v840_v38 }
 0x34f   : > { %1108 = shalt.err (!%p1105_p3)
}
 0x350   : > { %1038 = dma.vmem_to_hbm [thread:$0]  (%p1224_p5), %s858_s21, 64, %s860_s22, %s844_s28   ;;  %v822_v39 = vpop.f32.mrf.mxu0  ;;  %v835_v40 = vpop.f32.mrf.mxu1 }
 0x351 PF: > { %p1044_p4 = scmp.ge.s32.totalorder %s1143_s27, 2  ;;  %s871_s14 = sand.u32 1, %s1131_s24  }
 0x352   : > { %s872_s17 = scalar_lea.sflag [#allocation3], %s871_s14 }
 0x353   : > { %p1041_p7 = pnand %p1044_p4, %p1228_p6 }
 0x355   : > { %p1042_p8 = pneg %p1041_p7 }
 0x357   : > { %1126 = dma.done.wait (%p1042_p8), %s872_s17, 64  }
 0x358   : > { %1128 = vsyncadd (%p1042_p8), %s872_s17, 4294967232  ;;  %p17_p5 = scmp.ge.s32.totalorder %s1211_s30, 4   ;;  %s1375_s24 = smov %s1135_s25 }
 0x359   : > { %s1376_s25 = smov %s1139_s26  ;;  %s1377_s26 = smov %s1222_s10 }
 0x35a   : > { %s1378_s27 = smov %s1211_s30  ;;  %19 = sbr.rel (!%p17_p5) target bundleno = 3 (0x3), region = 87 }
 0x35f   :  { %878 = vsyncpa [#allocation3], 1 }
 0x360   :  { %880 = vsyncpa [#allocation3 + $0x1], 1 }

</bundles_post_ra>
